<compile_context>
chip_gen: v6e
topology: v6e:2x2x1
jax: 0.10.0
libtpu: 0.0.40
codegen_flags: <defaults>
</compile_context>

<pallas_src>
import jax
import jax.numpy as jnp
from jax.experimental import pallas as pl
from jax.experimental.pallas import tpu as pltpu


def _round_up(x, m):
    return (x + m - 1) // m * m


# ----------------------------------------------------------------------------
# Pallas kernel: fused (conv3x3 + BN affine + ReLU) x 2, TB images per step
# ----------------------------------------------------------------------------
def _make_kernel(H, HR):
    """H = real image rows, HR = row-padded rows per image (multiple of 8)."""

    def kernel(xs_ref, w1_ref, s1_ref, c1_ref, w2_ref, s2_ref, c2_ref, o_ref):
        # xs_ref : (MB, 3*WFI) bf16  pre-shifted conv1 LHS (MB = TB*HR rows)
        # w1_ref : (3*WFI, WFO) bf16 banded conv1 weights (raw, no BN scale)
        # s1_ref : (1, WFO) f32      BN scale lane vector (conv1)
        # c1_ref : (1, WFO) f32      bias + BN shift lane vector (conv1)
        # w2_ref : (3*WFO, WFO) bf16 banded conv2 weights
        # s2_ref / c2_ref : (1, WFO) f32
        # o_ref  : (MB, WFO) f32
        MB, WFO = o_ref.shape

        # ---- conv1: one lane-dense matmul (ky taps pre-shifted in wrapper) --
        acc1 = jnp.dot(xs_ref[...], w1_ref[...],
                       preferred_element_type=jnp.float32)
        h1 = jnp.maximum(acc1 * s1_ref[...] + c1_ref[...], 0.0)

        rim = jax.lax.broadcasted_iota(jnp.int32, (MB, 1), 0) % HR  # row in image
        if HR != H:
            # zero the row-padding rows so they cannot pollute conv2
            h1 = jnp.where(rim < H, h1, 0.0)
        h1 = h1.astype(jnp.bfloat16)

        # ---- conv2: three aligned partial-product dots (one per ky tap), ----
        # ---- combined with XLU row-rolls + boundary masks (no unaligned  ----
        # ---- slices / materialized concats).                             ----
        p0 = jnp.dot(h1, w2_ref[0 * WFO:1 * WFO, :],
                     preferred_element_type=jnp.float32)
        p1 = jnp.dot(h1, w2_ref[1 * WFO:2 * WFO, :],
                     preferred_element_type=jnp.float32)
        p2 = jnp.dot(h1, w2_ref[2 * WFO:3 * WFO, :],
                     preferred_element_type=jnp.float32)
        # output row r needs h1 rows r-1 (ky=0), r (ky=1), r+1 (ky=2);
        # rows outside the image ('same' padding / image boundary) are zero.
        t0 = jnp.where(rim == 0, 0.0, pltpu.roll(p0, 1, axis=0))
        t2 = jnp.where(rim == H - 1, 0.0, pltpu.roll(p2, MB - 1, axis=0))
        acc2 = p1 + t0 + t2

        o_ref[...] = jnp.maximum(acc2 * s2_ref[...] + c2_ref[...], 0.0)

    return kernel


def _conv_block_pallas(xs, w1b, s1v, c1v, w2b, s2v, c2v, H, HR):
    G, MB, K1 = xs.shape
    WFO = w1b.shape[1]
    K2 = w2b.shape[0]

    flops = 2 * G * MB * WFO * (K1 + K2)
    bytes_accessed = (xs.size * 2 + w1b.size * 2 + w2b.size * 2
                      + (s1v.size + c1v.size + s2v.size + c2v.size) * 4
                      + G * MB * WFO * 4)

    return pl.pallas_call(
        _make_kernel(H, HR),
        out_shape=jax.ShapeDtypeStruct((G, MB, WFO), jnp.float32),
        grid=(G,),
        in_specs=[
            pl.BlockSpec((None, MB, K1), lambda g: (g, 0, 0)),
            pl.BlockSpec((K1, WFO), lambda g: (0, 0)),
            pl.BlockSpec((1, WFO), lambda g: (0, 0)),
            pl.BlockSpec((1, WFO), lambda g: (0, 0)),
            pl.BlockSpec((K2, WFO), lambda g: (0, 0)),
            pl.BlockSpec((1, WFO), lambda g: (0, 0)),
            pl.BlockSpec((1, WFO), lambda g: (0, 0)),
        ],
        out_specs=pl.BlockSpec((None, MB, WFO), lambda g: (g, 0, 0)),
        compiler_params=pltpu.CompilerParams(
            dimension_semantics=("parallel",),
            # explicit limit: safe on v5e/v6e (128 MiB) and v7x (64 MiB)
            vmem_limit_bytes=32 * 1024 * 1024),
        cost_estimate=pl.CostEstimate(
            flops=flops, transcendentals=0, bytes_accessed=bytes_accessed),
    )(xs, w1b, s1v, c1v, w2b, s2v, c2v)


# ----------------------------------------------------------------------------
# One-time parameter preprocessing (hoisted out of the per-forward path)
# ----------------------------------------------------------------------------
def _band_weights(w_oihw, W, wf_seg, wf_out):
    """(3*wf_seg, wf_out) block-banded matmul weight for a 3x3 'same' conv on
    the W*C lane layout (lane = wpos*C + c); the left/right 'same' padding is
    expressed by the valid-mask (out-of-range kx taps contribute zero)."""
    cout, cin = w_oihw.shape[0], w_oihw.shape[1]
    wk = jnp.transpose(w_oihw, (2, 3, 1, 0))          # (ky, kx, cin, cout)
    wi = jnp.arange(W)[:, None]
    wo = jnp.arange(W)[None, :]
    d = wi - wo                                        # = kx - 1
    valid = ((d >= -1) & (d <= 1)).astype(w_oihw.dtype)
    kx = jnp.clip(d + 1, 0, 2)
    bands = []
    for ky in range(3):
        blocks = wk[ky][kx] * valid[..., None, None]   # (W, W, cin, cout)
        band = jnp.transpose(blocks, (0, 2, 1, 3)).reshape(W * cin, W * cout)
        band = jnp.pad(band, ((0, wf_seg - W * cin), (0, wf_out - W * cout)))
        bands.append(band)
    return jnp.concatenate(bands, axis=0)              # (3*wf_seg, wf_out)


def _lane_vec(v, W, wf_out):
    """Per-channel vector broadcast to the W*C lane layout (0 on pad lanes)."""
    t = jnp.tile(v, W)
    return jnp.pad(t, (0, wf_out - t.shape[0])).reshape(1, wf_out)


def prepare_params(params, W, eps=1e-5):
    """Build cached banded weights / affine lane vectors. Call ONCE per model."""
    cout, cin2 = params["w1"].shape[0], params["w1"].shape[1]
    WFI = _round_up(W * cin2, 128)
    WFO = _round_up(W * cout, 128)

    weight_bytes = 3 * WFI * WFO * 2 + 3 * WFO * WFO * 2
    if weight_bytes > 12 * 1024 * 1024:
        # TODO(synk): switch to an H/W-tiled im2col formulation for large
        # images (banded weights scale as 3*(W*C)^2; v7x has only 64 MiB VMEM).
        raise NotImplementedError("banded-weight path too large for VMEM")

    # eval-mode BN: scale kept in f32 (applied post-matmul), shift folded with
    # the conv bias.  Weights stay unscaled before the bf16 cast.
    s1 = params["g1"] / jnp.sqrt(params["v1"] + eps)
    c1 = s1 * (params["b1"] - params["m1"]) + params["be1"]
    s2 = params["g2"] / jnp.sqrt(params["v2"] + eps)
    c2 = s2 * (params["b2"] - params["m2"]) + params["be2"]

    return dict(
        w1b=_band_weights(params["w1"], W, WFI, WFO).astype(jnp.bfloat16),
        w2b=_band_weights(params["w2"], W, WFO, WFO).astype(jnp.bfloat16),
        s1v=_lane_vec(s1, W, WFO), c1v=_lane_vec(c1, W, WFO),
        s2v=_lane_vec(s2, W, WFO), c2v=_lane_vec(c2, W, WFO),
    )


# ----------------------------------------------------------------------------
# Forward
# ----------------------------------------------------------------------------
def _embed_q(x, q):
    """Replicates the q -> (B, C, H, W) embedding from ConditionalEncoder."""
    B, C, H, W = x.shape
    qe = q[:, None, :, None]                                   # (B, 1, Q, 1)
    if qe.shape[1] > C:
        qe = qe[:, :C]
    elif qe.shape[1] < C:
        qe = jnp.pad(qe, ((0, 0), (0, C - qe.shape[1]), (0, 0), (0, 0)))
    if qe.shape[2] > H:
        qe = qe[:, :, :H]
    elif qe.shape[2] < H:
        qe = jnp.pad(qe, ((0, 0), (0, 0), (0, H - qe.shape[2]), (0, 0)))
    if qe.shape[3] > W:
        qe = qe[:, :, :, :W]
    elif qe.shape[3] < W:
        assert H == W, "diag_embed branch requires H == W (as in the torch code)"
        qd = qe[..., 0]                                        # (B, C, H)
        qe = qd[..., :, None] * jnp.eye(H, dtype=qd.dtype)     # (B, C, H, H)
    return jnp.concatenate([x, qe], axis=1)                    # (B, 2C, H, W)


def _num_groups(B, HR):
    """Grid steps: 2 'parallel' steps on v7x (one per TensorCore), otherwise
    merge the batch into a single step's M dimension; split further only when
    a step would stack an excessive number of rows."""
    kind = ""
    try:
        kind = jax.devices()[0].device_kind.lower()
    except Exception:
        pass
    g = 2 if ("v7" in kind and B % 2 == 0) else 1
    while (B // g) * HR > 1024 and g * 2 <= B and B % (g * 2) == 0:
        g *= 2
    return g


def conditional_encoder_forward(x, q, prep, cout):
    """x: (B, C, H, W) NCHW, q: (B, Q). Returns (B, cout, H, W) NCHW."""
    nx = _embed_q(x, q)                                        # (B, 2C, H, W)
    B, cin2, H, W = nx.shape

    WFI = _round_up(W * cin2, 128)
    WFO = _round_up(W * cout, 128)
    assert prep["w1b"].shape == (3 * WFI, WFO), "prepared params mismatch"

    HR = _round_up(H, 8)
    G = _num_groups(B, HR)
    TB = B // G
    MB = TB * HR

    # NCHW -> NHWC -> flatten W*C -> zero-pad rows -> pre-shift the 3 ky taps
    # into the lane axis (all fused under jit with the producing computation).
    xn = jnp.transpose(nx, (0, 2, 3, 1)).reshape(B, H, W * cin2)
    xp = jnp.pad(xn, ((0, 0), (1, 1), (0, 0)))                 # (B, H+2, W*cin2)
    segs = []
    for ky in range(3):
        seg = xp[:, ky:ky + H, :]
        if WFI > W * cin2:
            seg = jnp.pad(seg, ((0, 0), (0, 0), (0, WFI - W * cin2)))
        segs.append(seg)
    xs = jnp.concatenate(segs, axis=-1)                        # (B, H, 3*WFI)
    if HR > H:
        xs = jnp.pad(xs, ((0, 0), (0, HR - H), (0, 0)))
    xs = xs.astype(jnp.bfloat16).reshape(G, MB, 3 * WFI)

    out = _conv_block_pallas(xs, prep["w1b"], prep["s1v"], prep["c1v"],
                             prep["w2b"], prep["s2v"], prep["c2v"], H, HR)
    out = out.reshape(B, HR, WFO)[:, :H, :W * cout]            # no-op slices here
    out = out.reshape(B, H, W, cout)
    return jnp.transpose(out, (0, 3, 1, 2))                    # back to NCHW


# ----------------------------------------------------------------------------
# Parameter init + pure-JAX references for sanity checks
# ----------------------------------------------------------------------------
def init_params(key, in_channels, out_channels):
    cin2 = in_channels * 2
    ks = jax.random.split(key, 10)
    return dict(
        w1=jax.random.normal(ks[0], (out_channels, cin2, 3, 3), jnp.float32) * 0.1,
        b1=jax.random.normal(ks[1], (out_channels,), jnp.float32) * 0.05,
        w2=jax.random.normal(ks[2], (out_channels, out_channels, 3, 3),
                             jnp.float32) * 0.1,
        b2=jax.random.normal(ks[3], (out_channels,), jnp.float32) * 0.05,
        # eval-mode BatchNorm2d running stats / affine (non-trivial values to
        # actually exercise the in-kernel affine path)
        g1=1.0 + 0.1 * jax.random.normal(ks[4], (out_channels,), jnp.float32),
        be1=0.05 * jax.random.normal(ks[5], (out_channels,), jnp.float32),
        m1=0.02 * jax.random.normal(ks[6], (out_channels,), jnp.float32),
        v1=jax.random.uniform(ks[7], (out_channels,), jnp.float32, 0.5, 1.5),
        g2=1.0 + 0.1 * jax.random.normal(ks[8], (out_channels,), jnp.float32),
        be2=0.05 * jax.random.normal(ks[9], (out_channels,), jnp.float32),
        m2=jnp.zeros((out_channels,), jnp.float32),
        v2=jnp.ones((out_channels,), jnp.float32),
    )


def _reference_f32(x, q, params, eps=1e-5):
    nx = _embed_q(x, q)

    def block(h, w, b, g, be, m, v):
        y = jax.lax.conv_general_dilated(
            h, w, (1, 1), "SAME",
            dimension_numbers=("NCHW", "OIHW", "NCHW"),
            precision=jax.lax.Precision.HIGHEST)
        y = y + b[None, :, None, None]
        y = (y - m[None, :, None, None]) / jnp.sqrt(v[None, :, None, None] + eps)
        y = y * g[None, :, None, None] + be[None, :, None, None]
        return jnp.maximum(y, 0.0)

    h = block(nx, params["w1"], params["b1"], params["g1"], params["be1"],
              params["m1"], params["v1"])
    return block(h, params["w2"], params["b2"], params["g2"], params["be2"],
                 params["m2"], params["v2"])


def _reference_bf16_matched(x, q, params, eps=1e-5):
    """Mirrors the kernel arithmetic (bf16 matmul operands, f32 accumulate and
    f32 scale/shift after the matmul) via lax.conv -- allows a tight check."""
    nx = _embed_q(x, q)

    def q16(a):
        return a.astype(jnp.bfloat16).astype(jnp.float32)

    def block(h, w, b, g, be, m, v):
        s = g / jnp.sqrt(v + eps)
        c = s * (b - m) + be
        y = jax.lax.conv_general_dilated(
            q16(h), q16(w), (1, 1), "SAME",
            dimension_numbers=("NCHW", "OIHW", "NCHW"),
            precision=jax.lax.Precision.HIGHEST)
        return jnp.maximum(y * s[None, :, None, None] + c[None, :, None, None], 0.0)

    h = block(nx, params["w1"], params["b1"], params["g1"], params["be1"],
              params["m1"], params["v1"])
    return block(h, params["w2"], params["b2"], params["g2"], params["be2"],
                 params["m2"], params["v2"])


if __name__ == "__main__":
    key = jax.random.PRNGKey(0)
    kx, kq, kp = jax.random.split(key, 3)

    B, C, H, W = 2, 4, 16, 16   # x: NCHW
    Q = 24                      # query length (exercises the crop + diag_embed path)
    COUT = 8

    x = jax.random.normal(kx, (B, C, H, W), jnp.float32)
    q = jax.random.normal(kq, (B, Q), jnp.float32)
    params = init_params(kp, C, COUT)

    # One-time preprocessing (banded weights, BN fold, bf16 cast) -- cached.
    prep = prepare_params(params, W)

    fwd = jax.jit(conditional_encoder_forward, static_argnums=(3,))
    out = jax.block_until_ready(fwd(x, q, prep, COUT))
    assert out.shape == (B, COUT, H, W), out.shape

    # Tight check against a reference that uses the same bf16 matmul operands:
    # validates the banded weights, pre-shifted slab, roll-combine and BN math.
    ref_tight = _reference_bf16_matched(x, q, params)
    if not jnp.allclose(out, ref_tight, atol=1e-2, rtol=1e-2):
        raise AssertionError("Pallas kernel does not match bf16-matched reference")

    # Looser end-to-end check vs the pure f32 module math; tolerance is the
    # deliberate budget for using bf16 MXU inputs.
    ref_f32 = _reference_f32(x, q, params)
    if not jnp.allclose(out, ref_f32, atol=5e-2, rtol=5e-2):
        raise AssertionError("Pallas kernel does not match f32 reference")

    print("KERNEL_OK")
</pallas_src>

<mosaic_0001>
module attributes {stable_mosaic.version = 11 : i64} {
  func.func @kernel(%arg0: i32, %arg1: memref<1x32x384xbf16, #tpu.memory_space<vmem>>, %arg2: memref<384x128xbf16, #tpu.memory_space<vmem>>, %arg3: memref<1x128xf32, #tpu.memory_space<vmem>>, %arg4: memref<1x128xf32, #tpu.memory_space<vmem>>, %arg5: memref<384x128xbf16, #tpu.memory_space<vmem>>, %arg6: memref<1x128xf32, #tpu.memory_space<vmem>>, %arg7: memref<1x128xf32, #tpu.memory_space<vmem>>, %arg8: memref<1x32x128xf32, #tpu.memory_space<vmem>>) attributes {dimension_semantics = [#tpu.dimension_semantics<parallel>], iteration_bounds = array<i64: 1>, scalar_prefetch = 0 : i64, scratch_operands = 0 : i64, tpu.core_type = #tpu.core_type<tc>, window_params = [{transform_indices = @transform_0, window_bounds = array<i64: 1, 32, 384>}, {pipeline_mode = #tpu.pipeline_mode<synchronous>, transform_indices = @transform_1, window_bounds = array<i64: 384, 128>}, {pipeline_mode = #tpu.pipeline_mode<synchronous>, transform_indices = @transform_2, window_bounds = array<i64: 1, 128>}, {pipeline_mode = #tpu.pipeline_mode<synchronous>, transform_indices = @transform_3, window_bounds = array<i64: 1, 128>}, {pipeline_mode = #tpu.pipeline_mode<synchronous>, transform_indices = @transform_4, window_bounds = array<i64: 384, 128>}, {pipeline_mode = #tpu.pipeline_mode<synchronous>, transform_indices = @transform_5, window_bounds = array<i64: 1, 128>}, {pipeline_mode = #tpu.pipeline_mode<synchronous>, transform_indices = @transform_6, window_bounds = array<i64: 1, 128>}, {transform_indices = @transform_7, window_bounds = array<i64: 1, 32, 128>}]} {
    %c0 = arith.constant 0 : index
    %c0_0 = arith.constant 0 : index
    %c0_1 = arith.constant 0 : index
    %0 = vector.load %arg1[%c0, %c0_0, %c0_1] : memref<1x32x384xbf16, #tpu.memory_space<vmem>>, vector<1x32x384xbf16>
    %1 = vector.shape_cast %0 : vector<1x32x384xbf16> to vector<32x384xbf16>
    %c0_2 = arith.constant 0 : index
    %c0_3 = arith.constant 0 : index
    %2 = vector.load %arg2[%c0_2, %c0_3] : memref<384x128xbf16, #tpu.memory_space<vmem>>, vector<384x128xbf16>
    %cst = arith.constant dense<0.000000e+00> : vector<32x128xf32>
    %3 = tpu.matmul %1, %2, %cst {dimension_numbers = #tpu.dot_dimension_numbers<[1], [0], [0], [1], [0, 0, 1, 1], [], []>} : vector<32x384xbf16>, vector<384x128xbf16>, vector<32x128xf32> -> vector<32x128xf32>
    %c0_4 = arith.constant 0 : index
    %c0_5 = arith.constant 0 : index
    %4 = vector.load %arg3[%c0_4, %c0_5] : memref<1x128xf32, #tpu.memory_space<vmem>>, vector<1x128xf32>
    %5 = vector.broadcast %4 : vector<1x128xf32> to vector<32x128xf32>
    %6 = arith.mulf %3, %5 : vector<32x128xf32>
    %c0_6 = arith.constant 0 : index
    %c0_7 = arith.constant 0 : index
    %7 = vector.load %arg4[%c0_6, %c0_7] : memref<1x128xf32, #tpu.memory_space<vmem>>, vector<1x128xf32>
    %8 = vector.broadcast %7 : vector<1x128xf32> to vector<32x128xf32>
    %9 = arith.addf %6, %8 : vector<32x128xf32>
    %cst_8 = arith.constant 0.000000e+00 : f32
    %10 = vector.broadcast %cst_8 : f32 to vector<32x128xf32>
    %11 = arith.maximumf %9, %10 : vector<32x128xf32>
    %12 = tpu.iota {dimensions = array<i32: 0>} : vector<32x1xi32>
    %c16_i32 = arith.constant 16 : i32
    %c0_i32 = arith.constant 0 : i32
    %13 = arith.cmpi eq, %c16_i32, %c0_i32 : i32
    %c1_i32 = arith.constant 1 : i32
    %14 = arith.select %13, %c1_i32, %c16_i32 : i32
    %15 = vector.broadcast %14 : i32 to vector<32x1xi32>
    %16 = arith.remsi %12, %15 : vector<32x1xi32>
    %c0_i32_9 = arith.constant 0 : i32
    %17 = vector.broadcast %c0_i32_9 : i32 to vector<32x1xi32>
    %18 = arith.cmpi ne, %16, %17 : vector<32x1xi32>
    %c0_i32_10 = arith.constant 0 : i32
    %19 = vector.broadcast %c0_i32_10 : i32 to vector<32x1xi32>
    %20 = arith.cmpi slt, %16, %19 : vector<32x1xi32>
    %c0_i32_11 = arith.constant 0 : i32
    %21 = arith.cmpi slt, %14, %c0_i32_11 : i32
    %22 = vector.broadcast %21 : i1 to vector<32x1xi1>
    %23 = vector.broadcast %22 : vector<32x1xi1> to vector<32x1xi1>
    %24 = arith.xori %20, %23 : vector<32x1xi1>
    %25 = arith.andi %24, %18 : vector<32x1xi1>
    %26 = vector.broadcast %14 : i32 to vector<32x1xi32>
    %27 = arith.addi %16, %26 : vector<32x1xi32>
    %28 = arith.select %25, %27, %16 : vector<32x1xi1>, vector<32x1xi32>
    %29 = arith.truncf %11 : vector<32x128xf32> to vector<32x128xbf16>
    %c0_12 = arith.constant 0 : index
    %c0_13 = arith.constant 0 : index
    %30 = vector.load %arg5[%c0_12, %c0_13] : memref<384x128xbf16, #tpu.memory_space<vmem>>, vector<128x128xbf16>
    %cst_14 = arith.constant dense<0.000000e+00> : vector<32x128xf32>
    %31 = tpu.matmul %29, %30, %cst_14 {dimension_numbers = #tpu.dot_dimension_numbers<[1], [0], [0], [1], [0, 0, 1, 1], [], []>} : vector<32x128xbf16>, vector<128x128xbf16>, vector<32x128xf32> -> vector<32x128xf32>
    %c128 = arith.constant 128 : index
    %c0_15 = arith.constant 0 : index
    %32 = vector.load %arg5[%c128, %c0_15] : memref<384x128xbf16, #tpu.memory_space<vmem>>, vector<128x128xbf16>
    %cst_16 = arith.constant dense<0.000000e+00> : vector<32x128xf32>
    %33 = tpu.matmul %29, %32, %cst_16 {dimension_numbers = #tpu.dot_dimension_numbers<[1], [0], [0], [1], [0, 0, 1, 1], [], []>} : vector<32x128xbf16>, vector<128x128xbf16>, vector<32x128xf32> -> vector<32x128xf32>
    %c256 = arith.constant 256 : index
    %c0_17 = arith.constant 0 : index
    %34 = vector.load %arg5[%c256, %c0_17] : memref<384x128xbf16, #tpu.memory_space<vmem>>, vector<128x128xbf16>
    %cst_18 = arith.constant dense<0.000000e+00> : vector<32x128xf32>
    %35 = tpu.matmul %29, %34, %cst_18 {dimension_numbers = #tpu.dot_dimension_numbers<[1], [0], [0], [1], [0, 0, 1, 1], [], []>} : vector<32x128xbf16>, vector<128x128xbf16>, vector<32x128xf32> -> vector<32x128xf32>
    %c0_i32_19 = arith.constant 0 : i32
    %36 = vector.broadcast %c0_i32_19 : i32 to vector<32x1xi32>
    %37 = arith.cmpi eq, %28, %36 : vector<32x1xi32>
    %c1_i32_20 = arith.constant 1 : i32
    %38 = tpu.dynamic_rotate %31 by %c1_i32_20 dim 0 : vector<32x128xf32>, i32 -> vector<32x128xf32>
    %cst_21 = arith.constant 0.000000e+00 : f32
    %39 = vector.shape_cast %37 : vector<32x1xi1> to vector<32x1xi1>
    %40 = vector.broadcast %39 : vector<32x1xi1> to vector<32x128xi1>
    %41 = vector.broadcast %cst_21 : f32 to vector<32x128xf32>
    %42 = arith.select %40, %41, %38 : vector<32x128xi1>, vector<32x128xf32>
    %c15_i32 = arith.constant 15 : i32
    %43 = vector.broadcast %c15_i32 : i32 to vector<32x1xi32>
    %44 = arith.cmpi eq, %28, %43 : vector<32x1xi32>
    %c31_i32 = arith.constant 31 : i32
    %45 = tpu.dynamic_rotate %35 by %c31_i32 dim 0 : vector<32x128xf32>, i32 -> vector<32x128xf32>
    %cst_22 = arith.constant 0.000000e+00 : f32
    %46 = vector.shape_cast %44 : vector<32x1xi1> to vector<32x1xi1>
    %47 = vector.broadcast %46 : vector<32x1xi1> to vector<32x128xi1>
    %48 = vector.broadcast %cst_22 : f32 to vector<32x128xf32>
    %49 = arith.select %47, %48, %45 : vector<32x128xi1>, vector<32x128xf32>
    %50 = arith.addf %33, %42 : vector<32x128xf32>
    %51 = arith.addf %50, %49 : vector<32x128xf32>
    %c0_23 = arith.constant 0 : index
    %c0_24 = arith.constant 0 : index
    %52 = vector.load %arg6[%c0_23, %c0_24] : memref<1x128xf32, #tpu.memory_space<vmem>>, vector<1x128xf32>
    %53 = vector.broadcast %52 : vector<1x128xf32> to vector<32x128xf32>
    %54 = arith.mulf %51, %53 : vector<32x128xf32>
    %c0_25 = arith.constant 0 : index
    %c0_26 = arith.constant 0 : index
    %55 = vector.load %arg7[%c0_25, %c0_26] : memref<1x128xf32, #tpu.memory_space<vmem>>, vector<1x128xf32>
    %56 = vector.broadcast %55 : vector<1x128xf32> to vector<32x128xf32>
    %57 = arith.addf %54, %56 : vector<32x128xf32>
    %cst_27 = arith.constant 0.000000e+00 : f32
    %58 = vector.broadcast %cst_27 : f32 to vector<32x128xf32>
    %59 = arith.maximumf %57, %58 : vector<32x128xf32>
    %c0_28 = arith.constant 0 : index
    %c0_29 = arith.constant 0 : index
    %c0_30 = arith.constant 0 : index
    %60 = vector.load %arg8[%c0_28, %c0_29, %c0_30] : memref<1x32x128xf32, #tpu.memory_space<vmem>>, vector<1x32x128xf32>
    %61 = vector.shape_cast %60 : vector<1x32x128xf32> to vector<32x128xf32>
    %62 = vector.shape_cast %59 : vector<32x128xf32> to vector<1x32x128xf32>
    tpu.vector_store %arg8[%c0_28, %c0_29, %c0_30], %62 {strides = array<i32>} : memref<1x32x128xf32, #tpu.memory_space<vmem>>, vector<1x32x128xf32>,
    return
  }
  func.func @transform_0(%arg0: i32) -> (i32, i32, i32) {
    %c0_i32 = arith.constant 0 : i32
    %c0_i32_0 = arith.constant 0 : i32
    %c0_i32_1 = arith.constant 0 : i32
    return %arg0, %c0_i32, %c0_i32_0 : i32, i32, i32
  }
  func.func @transform_1(%arg0: i32) -> (i32, i32) {
    %c0_i32 = arith.constant 0 : i32
    %c0_i32_0 = arith.constant 0 : i32
    %c0_i32_1 = arith.constant 0 : i32
    return %c0_i32, %c0_i32_0 : i32, i32
  }
  func.func @transform_2(%arg0: i32) -> (i32, i32) {
    %c0_i32 = arith.constant 0 : i32
    %c0_i32_0 = arith.constant 0 : i32
    %c0_i32_1 = arith.constant 0 : i32
    return %c0_i32, %c0_i32_0 : i32, i32
  }
  func.func @transform_3(%arg0: i32) -> (i32, i32) {
    %c0_i32 = arith.constant 0 : i32
    %c0_i32_0 = arith.constant 0 : i32
    %c0_i32_1 = arith.constant 0 : i32
    return %c0_i32, %c0_i32_0 : i32, i32
  }
  func.func @transform_4(%arg0: i32) -> (i32, i32) {
    %c0_i32 = arith.constant 0 : i32
    %c0_i32_0 = arith.constant 0 : i32
    %c0_i32_1 = arith.constant 0 : i32
    return %c0_i32, %c0_i32_0 : i32, i32
  }
  func.func @transform_5(%arg0: i32) -> (i32, i32) {
    %c0_i32 = arith.constant 0 : i32
    %c0_i32_0 = arith.constant 0 : i32
    %c0_i32_1 = arith.constant 0 : i32
    return %c0_i32, %c0_i32_0 : i32, i32
  }
  func.func @transform_6(%arg0: i32) -> (i32, i32) {
    %c0_i32 = arith.constant 0 : i32
    %c0_i32_0 = arith.constant 0 : i32
    %c0_i32_1 = arith.constant 0 : i32
    return %c0_i32, %c0_i32_0 : i32, i32
  }
  func.func @transform_7(%arg0: i32) -> (i32, i32, i32) {
    %c0_i32 = arith.constant 0 : i32
    %c0_i32_0 = arith.constant 0 : i32
    %c0_i32_1 = arith.constant 0 : i32
    return %arg0, %c0_i32, %c0_i32_0 : i32, i32, i32
  }
}

</mosaic_0001>

<bundles_post_ra>
// kernel: conditional_encoder_forward.1
= control target key start
LH: loop header
LB: loop body
LE: loop exit
PB: predicated region body
PF: predicated region fallthrough
CT: control target
= control target key end

     0   :  { %s1379_s1 = inlined_call_operand.vmem [shape: bf16[384,128], index: 1, kind: input, shape index: {}]   ;;  %s1380_s0 = inlined_call_operand.vmem [shape: bf16[1,32,384], index: 0, kind: input, shape index: {}]   ;;  %s1381_s4 = inlined_call_operand.vmem [shape: bf16[384,128], index: 4, kind: input, shape index: {}]   ;;  %s1382_s2 = inlined_call_operand.vmem [shape: f32[1,128], index: 2, kind: input, shape index: {}]   ;;  %s1383_s3 = inlined_call_operand.vmem [shape: f32[1,128], index: 3, kind: input, shape index: {}]   ;;  %s1384_s5 = inlined_call_operand.vmem [shape: f32[1,128], index: 5, kind: input, shape index: {}]   ;;  %s1385_s6 = inlined_call_operand.vmem [shape: f32[1,128], index: 6, kind: input, shape index: {}]   ;;  %s1386_s7 = inlined_call_operand.vmem [shape: f32[1,32,128], index: 7, kind: output, shape index: {}]  }
   0x1   :  { %v1071_v0 = vld [vmem:[%s1379_s1 + $0x78] sm:$0xff]   ;;  %v1074_v3 = vld [vmem:[%s1379_s1 + $0x70] sm:$0xff]   ;;  %v1077_v6 = vld [vmem:[%s1379_s1 + $0x68] sm:$0xff]  }
   0x2   :  { %v1072_v1 = vld [vmem:[%s1379_s1 + $0x38] sm:$0xff]   ;;  %923 = vmatprep.subr.bf16.mxu0 %v1071_v0  ;;  %v1075_v4 = vld [vmem:[%s1379_s1 + $0x30] sm:$0xff]   ;;  %v1078_v7 = vld [vmem:[%s1379_s1 + $0x28] sm:$0xff]  }
   0x3   :  { %v1073_v2 = vld [vmem:[%s1379_s1 + $0xb8] sm:$0xff]   ;;  %924 = vmatpush3.bf16.msra.mxu0 %v1072_v1  ;;  %v1076_v5 = vld [vmem:[%s1379_s1 + $0xb0] sm:$0xff]   ;;  %v1079_v8 = vld [vmem:[%s1379_s1 + $0xa8] sm:$0xff]  }
   0x4   :  { %991 = vmatprep.subr.bf16.mxu1 %v1073_v2  ;;  %925 = vmatprep.subr.bf16.mxu0 %v1074_v3  ;;  %v1080_v9 = vld [vmem:[%s1379_s1 + $0x60] sm:$0xff]   ;;  %v1083_v12 = vld [vmem:[%s1379_s1 + $0x58] sm:$0xff]   ;;  %v1086_v15 = vld [vmem:[%s1379_s1 + $0x50] sm:$0xff]  }
   0x5   :  { %992 = vmatpush3.bf16.msra.mxu1 %v1073_v2  ;;  %v1081_v10 = vld [vmem:[%s1379_s1 + $0x20] sm:$0xff]   ;;  %v1085_v13 = vld [vmem:[%s1379_s1 + $0x98] sm:$0xff]   ;;  %v1088_v16 = vld [vmem:[%s1379_s1 + $0x90] sm:$0xff]  }
   0x6   :  { %993 = vmatprep.subr.bf16.mxu1 %v1076_v5  ;;  %v1082_v11 = vld [vmem:[%s1379_s1 + $0xa0] sm:$0xff]   ;;  %v1084_v14 = vld [vmem:[%s1379_s1 + $0x18] sm:$0xff]   ;;  %v1087_v17 = vld [vmem:[%s1379_s1 + $0x10] sm:$0xff]  }
   0x7   :  { %926 = vmatpush3.bf16.msra.mxu0 %v1075_v4  ;;  %v1089_v18 = vld [vmem:[%s1379_s1 + $0x48] sm:$0xff]   ;;  %v1092_v21 = vld [vmem:[%s1379_s1 + $0x40] sm:$0xff]   ;;  %v1103_v28 = vld [vmem:[%s1381_s4 + $0x38] sm:$0xff]  }
   0x8   :  { %927 = vmatprep.subr.bf16.mxu0 %v1077_v6  ;;  %v1090_v19 = vld [vmem:[%s1379_s1 + $0x8] sm:$0xff]   ;;  %v1094_v22 = vld [vmem:[%s1379_s1 + $0x80] sm:$0xff]   ;;  %v1104_v30 = vld [vmem:[%s1381_s4 + $0xb8] sm:$0xff]  }
   0x9   :  { %994 = vmatpush3.bf16.msra.mxu1 %v1076_v5  ;;  %v1091_v20 = vld [vmem:[%s1379_s1 + $0x88] sm:$0xff]   ;;  %v1097_v23 = vld [vmem:[%s1380_s0 + $0x4] ss:$12 sps:$4 sm:$0xff]   ;;  %v1111_v38 = vld [vmem:[%s1381_s4 + $0x18] sm:$0xff]  }
   0xa   :  { %995 = vmatprep.subr.bf16.mxu1 %v1079_v8  ;;  %v1098_v24 = vld [vmem:[%s1380_s0 + $0x8] ss:$12 sps:$4 sm:$0xff]   ;;  %v1093_v25 = vld [vmem:[%s1379_s1] sm:$0xff]   ;;  %291 = vmatprep.mubr.bf16.mxu0 %v1097_v23  ;;  %v1112_v39 = vld [vmem:[%s1381_s4 + $0x98] sm:$0xff]  }
   0xb   :  { %928 = vmatpush3.bf16.msra.mxu0 %v1078_v7  ;;  %v1095_v26 = vld [vmem:[%s1380_s0] ss:$12 sps:$4 sm:$0xff]   ;;  %1007 = vmatprep.mubr.bf16.mxu1 %v1098_v24  ;;  %v1100_v27 = vld [vmem:[%s1380_s0 + $0x1c] ss:$12 sps:$4 sm:$0xff]   ;;  %v1105_v31 = vld [vmem:[%s1381_s4 + $0x30] sm:$0xff]  }
   0xc   :  { %929 = vmatprep.subr.bf16.mxu0 %v1080_v9  ;;  %v1099_v29 = vld [vmem:[%s1380_s0 + $0x20] ss:$12 sps:$4 sm:$0xff]   ;;  %v1106_v32 = vld [vmem:[%s1381_s4 + $0xb0] sm:$0xff]   ;;  %v1102_v33 = vld [vmem:[%s1380_s0 + $0x18] ss:$12 sps:$4 sm:$0xff]  }
   0xd   :  { %996 = vmatpush3.bf16.msra.mxu1 %v1079_v8  ;;  %v1107_v34 = vld [vmem:[%s1381_s4 + $0x28] sm:$0xff]   ;;  %v1109_v36 = vld [vmem:[%s1381_s4 + $0x20] sm:$0xff]   ;;  %v1113_v40 = vld [vmem:[%s1381_s4 + $0x10] sm:$0xff]  }
   0xe   :  { %997 = vmatprep.subr.bf16.mxu1 %v1082_v11  ;;  %v1108_v35 = vld [vmem:[%s1381_s4 + $0xa8] sm:$0xff]   ;;  %v1110_v37 = vld [vmem:[%s1381_s4 + $0xa0] sm:$0xff]   ;;  %v1114_v41 = vld [vmem:[%s1381_s4 + $0x90] sm:$0xff]  }
   0xf   :  { %930 = vmatpush3.bf16.msra.mxu0 %v1081_v10  ;;  %v1115_v42 = vld [vmem:[%s1381_s4 + $0x8] sm:$0xff]   ;;  %v1117_v44 = vld [vmem:[%s1381_s4] sm:$0xff]   ;;  %v1119_v46 = vld [vmem:[%s1381_s4 + $0x78] sm:$0xff]  }
  0x10   :  { %931 = vmatprep.subr.bf16.mxu0 %v1083_v12  ;;  %v1116_v43 = vld [vmem:[%s1381_s4 + $0x88] sm:$0xff]   ;;  %v1118_v45 = vld [vmem:[%s1381_s4 + $0x80] sm:$0xff]   ;;  %v1124_v23 = vld [vmem:[%s1381_s4 + $0x50] sm:$0xff]  }
  0x11   :  { %998 = vmatpush3.bf16.msra.mxu1 %v1082_v11  ;;  %v895_v53 = vld [vmem:[%s1382_s2] ss:$0 sm:$0xff]  ;;  %v1125_v24 = vld [vmem:[%s1381_s4 + $0x48] sm:$0xff]  }
  0x12   :  { %999 = vmatprep.subr.bf16.mxu1 %v1085_v13  ;;  %v896_v59 = vld [vmem:[%s1383_s3] ss:$0 sm:$0xff] }
  0x13   :  { %932 = vmatpush3.bf16.msra.mxu0 %v1084_v14 }
  0x14   :  { %933 = vmatprep.subr.bf16.mxu0 %v1086_v15 }
  0x15   :  { %1000 = vmatpush3.bf16.msra.mxu1 %v1085_v13 }
  0x16   :  { %1001 = vmatprep.subr.bf16.mxu1 %v1088_v16 }
  0x17   :  { %934 = vmatpush3.bf16.msra.mxu0 %v1087_v17 }
  0x18   :  { %935 = vmatprep.subr.bf16.mxu0 %v1089_v18 }
  0x19   :  { %1002 = vmatpush3.bf16.msra.mxu1 %v1088_v16 }
  0x1a   :  { %1003 = vmatprep.subr.bf16.mxu1 %v1091_v20 }
  0x1b   :  { %936 = vmatpush3.bf16.msra.mxu0 %v1090_v19  ;;  %v1120_v19 = vld [vmem:[%s1381_s4 + $0x70] sm:$0xff]  }
  0x1c   :  { %937 = vmatprep.subr.bf16.mxu0 %v1092_v21  ;;  %v1122_v21 = vld [vmem:[%s1381_s4 + $0x60] sm:$0xff]  }
  0x1d   :  { %1004 = vmatpush3.bf16.msra.mxu1 %v1091_v20  ;;  %v1121_v20 = vld [vmem:[%s1381_s4 + $0x68] sm:$0xff]  }
  0x1e   :  { %1005 = vmatprep.subr.bf16.mxu1 %v1094_v22 }
  0x1f   :  { %938 = vmatpush3.bf16.msra.mxu0 %v1093_v25  ;;  %v1126_v25 = vld [vmem:[%s1381_s4 + $0x40] sm:$0xff]  }
  0x20   :  { %1011 = vmatprep.subr.bf16.mxu0 %v1103_v28 }
  0x21   :  { %1006 = vmatpush3.bf16.msra.mxu1 %v1094_v22  ;;  %v1123_v22 = vld [vmem:[%s1381_s4 + $0x58] sm:$0xff]  }
  0x22   :  { %292 = vmatmul.mubr.bf16.vlgmr.msra.gmra.mxu0 %v1095_v26  ;;  %1031 = vmatprep.subr.bf16.mxu1 %v1104_v30 }
  0x23   :  { %299 = vmatprep.mubr.bf16.mxu0 %v1100_v27  ;;  %1012 = vmatpush3.bf16.msra.mxu0 %v1103_v28  ;;  %v383_v28 = vlaneseq }
  0x24   :  { %1008 = vmatmul.mubr.bf16.vlgmr.msra.gmra.mxu1 %v1099_v29  ;;  %1013 = vmatprep.subr.bf16.mxu0 %v1105_v31 }
  0x25   :  { %1032 = vmatpush3.bf16.msra.mxu1 %v1104_v30 }
  0x26   :  { %1033 = vmatprep.subr.bf16.mxu1 %v1106_v32 }
  0x27   :  { %1014 = vmatpush3.bf16.msra.mxu0 %v1105_v31  ;;  %v384_v31 = vshrl.u32 %v383_v28, 7 }
  0x28   :  { %1015 = vmatprep.subr.bf16.mxu0 %v1107_v34 }
  0x29   :  { %1034 = vmatpush3.bf16.msra.mxu1 %v1106_v32  ;;  %vm688_vm0 = vcmp.lt.s32.totalorder %v384_v31, 1  ;;  %vm713_vm2 = vcmp.lt.s32.totalorder %v384_v31, 7 }
  0x2a   :  { %300 = vmatmul.mubr.bf16.gmra.mxu0 %v1102_v33  ;;  %1035 = vmatprep.subr.bf16.mxu1 %v1108_v35  ;;  %v386_v33 = vadd.s32 16, %v384_v31 }
  0x2b   :  { %1016 = vmatpush3.bf16.msra.mxu0 %v1107_v34 }
  0x2c   :  { %1017 = vmatprep.subr.bf16.mxu0 %v1109_v36 }
  0x2d   :  { %1036 = vmatpush3.bf16.msra.mxu1 %v1108_v35 }
  0x2e   :  { %1037 = vmatprep.subr.bf16.mxu1 %v1110_v37 }
  0x2f   :  { %1018 = vmatpush3.bf16.msra.mxu0 %v1109_v36 }
  0x30   :  { %1019 = vmatprep.subr.bf16.mxu0 %v1111_v38 }
  0x31   :  { %1038 = vmatpush3.bf16.msra.mxu1 %v1110_v37  ;;  %v406_v37 = vand.u32 15, %v386_v33 }
  0x32   :  { %1039 = vmatprep.subr.bf16.mxu1 %v1112_v39 }
  0x33   :  { %1020 = vmatpush3.bf16.msra.mxu0 %v1111_v38  ;;  %vm682_vm1 = vcmp.eq.s32.totalorder %v406_v37, 0 }
  0x34   :  { %1021 = vmatprep.subr.bf16.mxu0 %v1113_v40 }
  0x35   :  { %1040 = vmatpush3.bf16.msra.mxu1 %v1112_v39 }
  0x36   :  { %1041 = vmatprep.subr.bf16.mxu1 %v1114_v41 }
  0x37   :  { %1022 = vmatpush3.bf16.msra.mxu0 %v1113_v40  ;;  %v392_v40 = vand.u32 15, %v384_v31 }
  0x38   :  { %1023 = vmatprep.subr.bf16.mxu0 %v1115_v42 }
  0x39   :  { %1042 = vmatpush3.bf16.msra.mxu1 %v1114_v41  ;;  %v387_v41 = vadd.s32 24, %v384_v31  ;;  %vm1336_vm3 = vcmp.eq.s32.totalorder %v392_v40, 0 }
  0x3a   :  { %1043 = vmatprep.subr.bf16.mxu1 %v1116_v43 }
  0x3b   :  { %1024 = vmatpush3.bf16.msra.mxu0 %v1115_v42  ;;  %v385_v42 = vadd.s32 8, %v384_v31 }
  0x3c   :  { %1025 = vmatprep.subr.bf16.mxu0 %v1117_v44 }
  0x3d   :  { %1044 = vmatpush3.bf16.msra.mxu1 %v1116_v43 }
  0x3e   :  { %1045 = vmatprep.subr.bf16.mxu1 %v1118_v45 }
  0x3f   :  { %1026 = vmatpush3.bf16.msra.mxu0 %v1117_v44 }
  0x40   :  { %1051 = vmatprep.subr.bf16.mxu0 %v1119_v46 }
  0x41   :  { %1046 = vmatpush3.bf16.msra.mxu1 %v1118_v45 }
  0xe2   :  { %v939_v47 = vpop.f32.mrf.mxu0 }
  0xe4   :  { %v940_v48 = vpop.f32.mrf.mxu0  ;;  %v1009_v49 = vpop.f32.mrf.mxu1 }
  0xe5   :  { %v941_v50 = vadd.f32 %v940_v48, %v939_v47 }
  0xe6   :  { %v942_v51 = vpop.f32.mrf.mxu0  ;;  %v342_v52 = vpop.f32.mrf.mxu1 }
  0xe7   :  { %v343_v54 = vadd.f32 %v941_v50, %v342_v52 }
  0xe8   :  { %v943_v55 = vpop.f32.mrf.mxu0  ;;  %v1010_v56 = vpop.f32.mrf.mxu1 }
  0xe9   :  { %v364_v57 = vmul.f32 %v895_v53, %v343_v54  ;;  %v944_v58 = vadd.f32 %v943_v55, %v942_v51  ;;  %v399_v54 = vand.u32 15, %v385_v42 }
  0xea   :  { %v945_v60 = vpop.f32.mrf.mxu0  ;;  %v345_v61 = vpop.f32.mrf.mxu1 }
  0xeb   :  { %v346_v62 = vadd.f32 %v944_v58, %v345_v61  ;;  %v375_v0 = vadd.f32 %v896_v59, %v364_v57  ;;  %v921_v58 = vld [vmem:[%s1384_s5] ss:$0 sm:$0xff]  ;;  %vm1357_vm5 = vcmp.eq.s32.totalorder %v399_v54, 15 }
  0xec   :  { %v946_v63 = vpop.f32.mrf.mxu0 }
  0xed   :  { %v365_v1 = vmul.f32 %v895_v53, %v346_v62  ;;  %v947_v2 = vadd.f32 %v946_v63, %v945_v60  ;;  %v379_v7 = vmax.f32 %v375_v0, 0.0 }
  0xee   :  { %v948_v3 = vpop.f32.mrf.mxu0 }
  0xef   :  { %v376_v4 = vadd.f32 %v896_v59, %v365_v1  ;;  %v351_v5 = vadd.f32 %v1009_v49, %v947_v2  ;;  %v413_v49 = vand.u32 15, %v387_v41  ;;  %v922_v1 = vld [vmem:[%s1385_s6] ss:$0 sm:$0xff] }
  0xf0   :  { %v949_v6 = vpop.f32.mrf.mxu0 }
  0xf1   :  { %v380_v8 = vmax.f32 %v376_v4, 0.0  ;;  %v366_v9 = vmul.f32 %v895_v53, %v351_v5  ;;  %v950_v10 = vadd.f32 %v949_v6, %v948_v3  ;;  %vm1347_vm4 = vcmp.eq.s32.totalorder %v413_v49, 15 }
  0xf3   :  { %v354_v11 = vadd.f32 %v1010_v56, %v950_v10  ;;  %v436_v12 = vpack.c.bf16 %v380_v8, %v379_v7  ;;  %v377_v13 = vadd.f32 %v896_v59, %v366_v9 }
  0xf5   :  { %v367_v14 = vmul.f32 %v895_v53, %v354_v11  ;;  %1027 = vmatprep.mubr.bf16.mxu0 %v436_v12  ;;  %1047 = vmatprep.mubr.bf16.mxu1 %v436_v12  ;;  %v381_v16 = vmax.f32 %v377_v13, 0.0 }
  0xf7   :  { %v378_v15 = vadd.f32 %v896_v59, %v367_v14 }
  0xf9   :  { %v382_v17 = vmax.f32 %v378_v15, 0.0 }
  0xfb   :  { %v437_v18 = vpack.c.bf16 %v382_v17, %v381_v16 }
  0xfd   :  { %1028 = vmatmul.mubr.bf16.vlgmr.msra.gmra.mxu0 %v437_v18  ;;  %1048 = vmatmul.mubr.bf16.vlgmr.msra.gmra.mxu1 %v437_v18 }
  0xfe   :  { %1052 = vmatpush3.bf16.msra.mxu0 %v1119_v46  ;;  %1067 = vmatprep.mubr.bf16.mxu0 %v436_v12 }
  0xff   :  { %1053 = vmatprep.subr.bf16.mxu0 %v1120_v19 }
 0x102   :  { %1054 = vmatpush3.bf16.msra.mxu0 %v1120_v19 }
 0x103   :  { %1055 = vmatprep.subr.bf16.mxu0 %v1121_v20 }
 0x106   :  { %1056 = vmatpush3.bf16.msra.mxu0 %v1121_v20 }
 0x107   :  { %1057 = vmatprep.subr.bf16.mxu0 %v1122_v21 }
 0x10a   :  { %1058 = vmatpush3.bf16.msra.mxu0 %v1122_v21 }
 0x10b   :  { %1059 = vmatprep.subr.bf16.mxu0 %v1123_v22 }
 0x10e   :  { %1060 = vmatpush3.bf16.msra.mxu0 %v1123_v22 }
 0x10f   :  { %1061 = vmatprep.subr.bf16.mxu0 %v1124_v23 }
 0x112   :  { %1062 = vmatpush3.bf16.msra.mxu0 %v1124_v23 }
 0x113   :  { %1063 = vmatprep.subr.bf16.mxu0 %v1125_v24 }
 0x116   :  { %1064 = vmatpush3.bf16.msra.mxu0 %v1125_v24 }
 0x117   :  { %1065 = vmatprep.subr.bf16.mxu0 %v1126_v25 }
 0x11a   :  { %1066 = vmatpush3.bf16.msra.mxu0 %v1126_v25 }
 0x11d   :  { %1068 = vmatmul.mubr.bf16.vlgmr.msra.gmra.mxu0 %v437_v18 }
 0x1bd   :  { %v1029_v26 = vpop.f32.mrf.mxu0  ;;  %v1049_v29 = vpop.f32.mrf.mxu1 }
 0x1be   :  { %v686_v38 = vrot.slane %v1029_v26, 7  ;;  %v711_v50 = vrot.slane %v1049_v29, 1 }
 0x1bf   :  { %v536_v27 = vpop.f32.mrf.mxu0  ;;  %v665_v32 = vpop.f32.mrf.mxu1 }
 0x1c0   :  { %v684_v43 = vrot.slane %v536_v27, 7  ;;  %v709_v55 = vrot.slane %v665_v32, 1 }
 0x1c1   :  { %v1030_v30 = vpop.f32.mrf.mxu0  ;;  %v1050_v35 = vpop.f32.mrf.mxu1 }
 0x1c2   :  { %v687_v39 = vrot.slane %v1030_v30, 7  ;;  %v712_v46 = vrot.slane %v1050_v35, 1 }
 0x1c3   :  { %v539_v34 = vpop.f32.mrf.mxu0  ;;  %v668_v44 = vpop.f32.mrf.mxu1 }
 0x1c4   :  { %v685_v36 = vrot.slane %v539_v34, 7  ;;  %v692_v48 = vsel %vm688_vm0, %v687_v39, %v684_v43  ;;  %v710_v51 = vrot.slane %v668_v44, 1  ;;  %v714_v57 = vsel %vm713_vm2, %v711_v50, %v712_v46 }
 0x1c5   :  { %v701_v59 = vsel %vm1336_vm3, 0.0, %v692_v48  ;;  %v717_v0 = vsel %vm713_vm2, %v712_v46, %v709_v55  ;;  %v689_v3 = vsel %vm688_vm0, %v686_v38, %v687_v39 }
 0x1c6   :  { %v690_v45 = vsel %vm688_vm0, %v685_v36, %v686_v38  ;;  %v716_v2 = vsel %vm713_vm2, %v709_v55, %v710_v51  ;;  %v715_v6 = vsel %vm713_vm2, %v710_v51, %v711_v50  ;;  %v729_v10 = vsel %vm1347_vm4, 0.0, %v717_v0 }
 0x1c7   :  { %v703_v52 = vsel %vm682_vm1, 0.0, %v690_v45  ;;  %v691_v11 = vsel %vm688_vm0, %v684_v43, %v685_v36  ;;  %v727_v17 = vsel %vm1357_vm5, 0.0, %v715_v6 }
 0x1dd   :  { %v1069_v53 = vpop.f32.mrf.mxu0 }
 0x1de   :  { %v821_v56 = vadd.f32 %v1069_v53, %v703_v52 }
 0x1df   :  { %v812_v60 = vpop.f32.mrf.mxu0 }
 0x1e0   :  { %v829_v61 = vadd.f32 %v821_v56, %v714_v57  ;;  %v813_v62 = vadd.f32 %v812_v60, %v701_v59 }
 0x1e1   :  { %v1070_v4 = vpop.f32.mrf.mxu0 }
 0x1e2   :  { %v840_v7 = vmul.f32 %v921_v58, %v829_v61  ;;  %v827_v8 = vadd.f32 %v813_v62, %v716_v2  ;;  %v824_v9 = vadd.f32 %v1070_v4, %v689_v3 }
 0x1e3   :  { %v815_v12 = vpop.f32.mrf.mxu0 }
 0x1e4   :  { %v851_v13 = vadd.f32 %v922_v1, %v840_v7  ;;  %v838_v14 = vmul.f32 %v921_v58, %v827_v8  ;;  %v830_v15 = vadd.f32 %v824_v9, %v729_v10  ;;  %v816_v16 = vadd.f32 %v815_v12, %v691_v11 }
 0x1e6   :  { %v855_v18 = vmax.f32 %v851_v13, 0.0  ;;  %v849_v19 = vadd.f32 %v922_v1, %v838_v14  ;;  %v841_v20 = vmul.f32 %v921_v58, %v830_v15  ;;  %v828_v21 = vadd.f32 %v816_v16, %v727_v17 }
 0x1e8   :  { %859 = vst [vmem:[%s1386_s7 + $0x10] sm:$0xff] %v855_v18  ;;  %v853_v22 = vmax.f32 %v849_v19, 0.0  ;;  %v852_v23 = vadd.f32 %v922_v1, %v841_v20  ;;  %v839_v24 = vmul.f32 %v921_v58, %v828_v21 }
 0x1ea   :  { %857 = vst [vmem:[%s1386_s7] sm:$0xff] %v853_v22  ;;  %v856_v25 = vmax.f32 %v852_v23, 0.0  ;;  %v850_v26 = vadd.f32 %v922_v1, %v839_v24 }
 0x1ec   :  { %860 = vst [vmem:[%s1386_s7 + $0x18] sm:$0xff] %v856_v25  ;;  %v854_v27 = vmax.f32 %v850_v26, 0.0 }
 0x1ee   :  { %858 = vst [vmem:[%s1386_s7 + $0x8] sm:$0xff] %v854_v27 }

</bundles_post_ra>
